<compile_context>
chip_gen: v5e
topology: v5e:2x2
jax: 0.10.0
libtpu: 0.0.40
codegen_flags: <defaults>
</compile_context>

<pallas_src>
import math

import jax
import jax.numpy as jnp
from jax.experimental import pallas as pl
from jax.experimental.pallas import tpu as pltpu

# ---- hyperparameters (match the PyTorch module defaults) --------------------
S = 32.0
M1 = 0.2
M2 = 0.35
EASY_MARGIN = False

COS_M1 = math.cos(M1)
SIN_M1 = math.sin(M1)
TH = math.cos(math.pi - M1)
MM = math.sin(math.pi - M1) * M1
NORM_EPS = 1e-12  # F.normalize default eps


def _scaled_cosine_kernel(x_ref, w_ref, o_ref):
    # x_ref: [tB, Dp]  normalized features        (f32 or bf16)
    # w_ref: [Dp, tC]  normalized, s-scaled W^T   (f32 or bf16)
    # o_ref: [tB, tC]  f32  ->  s * cosine
    o_ref[...] = jnp.dot(
        x_ref[...], w_ref[...], preferred_element_type=jnp.float32
    ).astype(o_ref.dtype)


def _round_up(n, m):
    return ((n + m - 1) // m) * m


def _largest_tile(total, unit, max_tile, pref_unit=None):
    """Largest multiple of `unit` dividing `total`, <= max_tile; prefer pref_unit multiples."""
    best, best_pref = unit, None
    t = unit
    lim = min(total, max_tile)
    while t <= lim:
        if total % t == 0:
            best = t
            if pref_unit and t % pref_unit == 0:
                best_pref = t
        t += unit
    return best_pref if best_pref is not None else best


def _vmem_budget_bytes():
    cap = 64 * 1024 * 1024  # conservative fallback = v7x per-TensorCore VMEM
    try:
        cap = int(pltpu.get_tpu_info().vmem_capacity_bytes)
    except Exception:
        pass
    # Headroom for Mosaic internals; stays <= ~56 MiB on v7x, well within v5e/v6e.
    return min(int(cap * 0.85), cap - 8 * 1024 * 1024)


def combined_loss_margin(x, weight, label, *, use_bf16_matmul=True,
                         max_tile_b=512, max_tile_c=512):
    """x: [B, D] f32, weight: [C, D] f32, label: [B] int -> [B, C] f32 scaled logits."""
    B, D = x.shape
    C, D2 = weight.shape
    assert D == D2, "feature dims must match"
    label = label.astype(jnp.int32)

    # ---- one-time XLA preprocessing (hoisted out of the per-tile hot path) ----
    x32 = x.astype(jnp.float32)
    xn = x32 / jnp.maximum(
        jnp.sqrt(jnp.sum(x32 * x32, axis=1, keepdims=True)), NORM_EPS)
    w32 = weight.astype(jnp.float32)
    wn = w32 / jnp.maximum(
        jnp.sqrt(jnp.sum(w32 * w32, axis=1, keepdims=True)), NORM_EPS)

    # Margin only touches the label column -> compute it once per row in f32
    # from the tiny [B, D] gather (full precision even on the bf16 MXU path).
    cos_y = jnp.sum(xn * wn[label], axis=1)                        # [B]
    sin_y = jnp.sqrt(jnp.maximum(1.0 - cos_y * cos_y, 0.0))        # clamped: no NaN
    phi_y = cos_y * COS_M1 - sin_y * SIN_M1
    if EASY_MARGIN:
        phi_y = jnp.where(cos_y > 0, phi_y, cos_y)
    else:
        phi_y = jnp.where(cos_y - TH > 0, phi_y, cos_y - MM)
    delta = S * (phi_y - cos_y - M2)                               # [B]

    # Fold s into the normalized weights, transpose to [D, C] (plain NN matmul in
    # the kernel), and pad: D->Dp, C->Cp multiples of 128; B->Bp multiple of 8.
    mm_dtype = jnp.bfloat16 if use_bf16_matmul else jnp.float32
    Bp = _round_up(B, 8)
    Cp = _round_up(C, 128)
    Dp = _round_up(D, 128)

    wt = (S * wn).T.astype(mm_dtype)                               # [D, C]
    wt = jnp.pad(wt, ((0, Dp - D), (0, Cp - C)))
    xp = jnp.pad(xn.astype(mm_dtype), ((0, Bp - B), (0, Dp - D)))

    # ---- tile selection (prefer 256-multiples to fill v6e/v7x 256x256 MXUs) ----
    budget = _vmem_budget_bytes()
    tC = _largest_tile(Cp, 128, max_tile_c, pref_unit=256)
    tB = _largest_tile(Bp, 8, max_tile_b, pref_unit=256)
    eb = 2 if use_bf16_matmul else 4

    def footprint(tb, tc):
        # double-buffered x / W / f32 out blocks (no in-kernel temporaries left)
        return 2 * (tb * Dp * eb + Dp * tc * eb + tb * tc * 4)

    while footprint(tB, tC) > budget and (tB > 8 or tC > 128):
        if tC >= tB and tC > 128:
            tC = _largest_tile(Cp, 128, tC // 2, pref_unit=256)
        else:
            tB = _largest_tile(Bp, 8, tB // 2, pref_unit=256)
    # TODO(synk): feature dims so large that a single [*, Dp] block nears the VMEM
    # budget would need a third (reduction) grid axis over D; not needed for
    # ArcFace-scale feat dims.

    n_b, n_c = Bp // tB, Cp // tC

    # Grid order (C outer, B inner): W block index is constant across the inner
    # axis -> Pallas keeps it resident, so the weight matrix streams from HBM once.
    grid = (n_c, n_b)

    cost = pl.CostEstimate(
        flops=2 * Bp * Cp * Dp,
        transcendentals=0,
        bytes_accessed=xp.nbytes * n_c + wt.nbytes + Bp * Cp * 4,
    )

    out = pl.pallas_call(
        _scaled_cosine_kernel,
        out_shape=jax.ShapeDtypeStruct((Bp, Cp), jnp.float32),
        grid=grid,
        in_specs=[
            pl.BlockSpec((tB, Dp), lambda j, i: (i, 0)),   # xn row tile (full D)
            pl.BlockSpec((Dp, tC), lambda j, i: (0, j)),   # s*Wn^T tile (resident over i)
        ],
        out_specs=pl.BlockSpec((tB, tC), lambda j, i: (i, j)),
        compiler_params=pltpu.CompilerParams(
            dimension_semantics=("parallel", "parallel"),
            vmem_limit_bytes=budget,
        ),
        cost_estimate=cost,
    )(xp, wt)

    out = out[:B, :C]
    # Apply the per-row margin to the label column (tiny scatter-add, plain XLA).
    out = out.at[jnp.arange(B), label].add(delta)
    return out


def _reference(x, weight, label):
    """Pure-JAX f32 replica of the PyTorch forward (with the safe sqrt clamp)."""
    xn = x / jnp.maximum(jnp.linalg.norm(x, axis=1, keepdims=True), NORM_EPS)
    wn = weight / jnp.maximum(jnp.linalg.norm(weight, axis=1, keepdims=True), NORM_EPS)
    cosine = xn @ wn.T
    sine = jnp.sqrt(jnp.maximum(1.0 - cosine * cosine, 0.0))
    phi = cosine * COS_M1 - sine * SIN_M1
    if EASY_MARGIN:
        phi = jnp.where(cosine > 0, phi, cosine)
    else:
        phi = jnp.where(cosine - TH > 0, phi, cosine - MM)
    one_hot = jax.nn.one_hot(label, weight.shape[0], dtype=jnp.float32)
    out = one_hot * phi + (1.0 - one_hot) * cosine
    out = out - one_hot * M2
    return out * S


if __name__ == "__main__":
    feat_dim = 32       # pads to Dp=128
    num_classes = 200   # pads to Cp=256
    batch = 10          # pads to Bp=16

    key = jax.random.PRNGKey(0)
    kx, kw, kl = jax.random.split(key, 3)

    x = jax.random.normal(kx, (batch, feat_dim), dtype=jnp.float32)
    label = jax.random.randint(kl, (batch,), 0, num_classes, dtype=jnp.int32)

    # Xavier-uniform weight init: U(-a, a), a = sqrt(6 / (fan_in + fan_out))
    bound = math.sqrt(6.0 / (num_classes + feat_dim))
    weight = jax.random.uniform(
        kw, (num_classes, feat_dim), minval=-bound, maxval=bound, dtype=jnp.float32
    )

    ref = _reference(x, weight, label)

    # f32 MXU path with small forced tiles -> exercises a (2, 2) grid and the
    # W-residency across the inner axis; tight check vs the reference.
    out_f32 = combined_loss_margin(
        x, weight, label, use_bf16_matmul=False, max_tile_b=8, max_tile_c=128
    )
    jax.block_until_ready(out_f32)
    assert out_f32.shape == (batch, num_classes)
    assert jnp.allclose(out_f32, ref, atol=1e-3, rtol=1e-3), "f32 path mismatch vs reference"

    # bf16 MXU path with default (large) tiles -> single-tile grid, relaxed tolerance
    # on the scaled logits (margin column stays f32-exact since it is hoisted).
    out_bf16 = combined_loss_margin(x, weight, label, use_bf16_matmul=True)
    jax.block_until_ready(out_bf16)
    assert out_bf16.shape == (batch, num_classes)
    assert jnp.allclose(out_bf16, ref, atol=0.5), "bf16 path mismatch vs reference"

    print("KERNEL_OK")
</pallas_src>

<mosaic_0001>
module attributes {stable_mosaic.version = 11 : i64} {
  func.func @_scaled_cosine_kernel(%arg0: i32, %arg1: i32, %arg2: memref<8x128xf32, #tpu.memory_space<vmem>>, %arg3: memref<128x128xf32, #tpu.memory_space<vmem>>, %arg4: memref<8x128xf32, #tpu.memory_space<vmem>>) attributes {dimension_semantics = [#tpu.dimension_semantics<parallel>, #tpu.dimension_semantics<parallel>], iteration_bounds = array<i64: 2, 2>, scalar_prefetch = 0 : i64, scratch_operands = 0 : i64, tpu.core_type = #tpu.core_type<tc>, window_params = [{transform_indices = @transform_0, window_bounds = array<i64: 8, 128>}, {transform_indices = @transform_1, window_bounds = array<i64: 128, 128>}, {transform_indices = @transform_2, window_bounds = array<i64: 8, 128>}]} {
    %c0 = arith.constant 0 : index
    %c0_0 = arith.constant 0 : index
    %0 = vector.load %arg2[%c0, %c0_0] : memref<8x128xf32, #tpu.memory_space<vmem>>, vector<8x128xf32>
    %c0_1 = arith.constant 0 : index
    %c0_2 = arith.constant 0 : index
    %1 = vector.load %arg3[%c0_1, %c0_2] : memref<128x128xf32, #tpu.memory_space<vmem>>, vector<128x128xf32>
    %cst = arith.constant dense<0.000000e+00> : vector<8x128xf32>
    %2 = tpu.matmul %0, %1, %cst {dimension_numbers = #tpu.dot_dimension_numbers<[1], [0], [0], [1], [0, 0, 1, 1], [], []>} : vector<8x128xf32>, vector<128x128xf32>, vector<8x128xf32> -> vector<8x128xf32>
    %c0_3 = arith.constant 0 : index
    %c0_4 = arith.constant 0 : index
    %3 = vector.load %arg4[%c0_3, %c0_4] : memref<8x128xf32, #tpu.memory_space<vmem>>, vector<8x128xf32>
    tpu.vector_store %arg4[%c0_3, %c0_4], %2 {strides = array<i32>} : memref<8x128xf32, #tpu.memory_space<vmem>>, vector<8x128xf32>,
    return
  }
  func.func @transform_0(%arg0: i32, %arg1: i32) -> (i32, i32) {
    %c0_i32 = arith.constant 0 : i32
    %c0_i32_0 = arith.constant 0 : i32
    return %arg1, %c0_i32 : i32, i32
  }
  func.func @transform_1(%arg0: i32, %arg1: i32) -> (i32, i32) {
    %c0_i32 = arith.constant 0 : i32
    %c0_i32_0 = arith.constant 0 : i32
    return %c0_i32, %arg0 : i32, i32
  }
  func.func @transform_2(%arg0: i32, %arg1: i32) -> (i32, i32) {
    %c0_i32 = arith.constant 0 : i32
    return %arg1, %arg0 : i32, i32
  }
}

</mosaic_0001>

<bundles_post_ra>
// kernel: tpu_custom_call.1
= control target key start
LH: loop header
LB: loop body
LE: loop exit
PB: predicated region body
PF: predicated region fallthrough
CT: control target
= control target key end

     0   :  { %s1028_s0 = inlined_call_operand.hbm [shape: f32[16,128], index: 0, kind: input, shape index: {}]   ;;  %s1029_s1 = inlined_call_operand.hbm [shape: f32[128,256], index: 1, kind: input, shape index: {}]   ;;  %s1030_s2 = inlined_call_operand.hbm [shape: f32[16,256], index: 2, kind: output, shape index: {}]  }
   0x1   :  { %1037 = sst [smem:[#allocation20_spill]] %s1028_s0 }
   0x2   :  { %7 = vsyncpa [#allocation3], 0 }
   0x3   :  { %9 = vsyncpa [#allocation3 + $0x1], 0 }
   0x4   :  { %10 = vsyncpa [#allocation6], 0 }
   0x5   :  { %12 = vsyncpa [#allocation6 + $0x1], 0 }
   0x6   :  { %13 = vsyncpa [#allocation4], 0 }
   0x7   :  { %15 = vsyncpa [#allocation4 + $0x1], 0  ;;  %s759_s9 = smov 0   ;;  %s761_s10 = smov 0  }
   0x8   :  { %s763_s11 = smov 0   ;;  %s765_s12 = smov 0  }
   0x9   :  { %s767_s13 = smov 0   ;;  %s769_s14 = smov 0  }
   0xa   :  { %s771_s15 = smov 0   ;;  %s773_s16 = smov 0  }
   0xb   :  { %s775_s17 = smov 0   ;;  %s777_s18 = smov 0  }
   0xc   :  { %s779_s19 = smov 0   ;;  %s781_s20 = smov 0  }
   0xd   :  { %s783_s21 = smov 0   ;;  %s785_s22 = smov 0  }
   0xe LB: > { %1038 = sst [smem:[#allocation11_spill]] %s695_s11  ;;  %s378_s23 = sadd.s32 4294967295, %s739_s22   ;;  %s739_s22 = sphi %s785_s22, %s21_s22   ;;  %s735_s21 = sphi %s783_s21, %s1074_s21   ;;  %s731_s20 = sphi %s781_s20, %s1064_s20   ;;  %s727_s19 = sphi %s779_s19, %s1073_s19   ;;  %s723_s18 = sphi %s777_s18, %s1063_s18   ;;  %s719_s17 = sphi %s775_s17, %s1062_s17   ;;  %s715_s16 = sphi %s773_s16, %s1072_s16   ;;  %s711_s15 = sphi %s771_s15, %s1071_s15   ;;  %s707_s14 = sphi %s769_s14, %s1070_s14   ;;  %s703_s13 = sphi %s767_s13, %s1069_s13   ;;  %s699_s12 = sphi %s765_s12, %s1068_s12   ;;  %s695_s11 = sphi %s763_s11, %s1059_s11   ;;  %s691_s10 = sphi %s761_s10, %s1067_s10   ;;  %s687_s9 = sphi %s759_s9, %s1066_s9  }
   0xf   : > { %1039 = sst [smem:[#allocation12_spill]] %s719_s17  ;;  %s379_s24 = sadd.s32 4294967294, %s739_s22  }
  0x10   : > { %1040 = sst [smem:[#allocation13_spill]] %s731_s20  ;;  %s30_s25 = sadd.s32 1, %s731_s20 }
  0x11   : > { %s33_s26 = sadd.s32 1, %s735_s21  ;;  %p31_p0 = scmp.ge.s32.totalorder %s30_s25, 2 }
  0x12   : > { %s40_s27 = sadd.s32 1, %s719_s17  ;;  %p47_p1 = scmp.ne.s32.totalorder %s719_s17, %s715_s16 }
  0x13   : > { %p48_p2 = scmp.eq.s32.totalorder %s739_s22, 0  ;;  %s1076_s25 = smov (%p31_p0, %s30_s25), 0 }
  0x14   : > { %1041 = sst [smem:[#allocation14_spill]] %s1076_s25  ;;  %s1078_s26 = smov (!%p31_p0, %s33_s26), %s735_s21 }
  0x15   : > { %s37_s28 = ssub.s32 %s731_s20, %s1076_s25  ;;  %p842_p3 = por %p48_p2, %p47_p1 }
  0x16   : > { %p35_p4 = scmp.ge.s32.totalorder %s1078_s26, 2  ;;  %p38_p5 = scmp.eq.s32.totalorder %s37_s28, 0 }
  0x17   : > { %p53_p6 = scmp.ne.s32.totalorder %s715_s16, %s711_s15  ;;  %p54_p7 = scmp.eq.s32.totalorder %s378_s23, 0 }
  0x18   : > { %s1080_s26 = smov (%p35_p4, %s1078_s26), 0  ;;  %s66_s5 = sadd.s32 1, %s707_s14 }
  0x19   : > { %1043 = sst [smem:[#allocation15_spill]] %s1080_s26  ;;  %p854_p8 = por %p54_p7, %p53_p6 }
  0x1a   : > { %s852_s30 = scalar_select %p38_p5, %s719_s17, %s40_s27  }
  0x1b   : > { %s63_s4 = ssub.s32 %s735_s21, %s1080_s26  ;;  %p73_p10 = scmp.ne.s32.totalorder %s707_s14, %s703_s13 }
  0x1c   : > { %1044 = sst [smem:[#allocation16_spill]] %s852_s30  ;;  %p64_p9 = scmp.eq.s32.totalorder %s63_s4, 0 }
  0x1d   : > { %p79_p11 = scmp.ne.s32.totalorder %s703_s13, %s699_s12  ;;  %p870_p12 = por %p73_p10, %p48_p2 }
  0x1e   : > { %s866_s6 = scalar_select %p64_p9, %s707_s14, %s66_s5  }
  0x1f   : > { %p874_p13 = por %p79_p11, %p54_p7  ;;  %s91_s15 = sor.u32 %s63_s4, %s37_s28 }
  0x20   : > { %1046 = sst [smem:[#allocation17_spill]] %s866_s6  ;;  %s94_s27 = sadd.s32 1, %s695_s11 }
  0x21   : > { %p92_p0 = scmp.eq.s32.totalorder %s91_s15, 0  ;;  %p104_p1 = scmp.ne.s32.totalorder %s695_s11, %s691_s10 }
  0x22   : > { %p105_p4 = scmp.eq.s32.totalorder %s378_s23, 3  ;;  %p110_p5 = scmp.ne.s32.totalorder %s691_s10, %s687_s9 }
  0x23   : > { %s886_s12 = scalar_select %p92_p0, %s695_s11, %s94_s27  }
  0x24   : > { %p888_p2 = por %p105_p4, %p104_p1  ;;  %p111_p6 = scmp.eq.s32.totalorder %s379_s24, 3 }
  0x25   : > { %1049 = sst [smem:[#allocation18_spill]] %s886_s12  ;;  %p412_p7 = scmp.lt.s32.totalorder %s739_s22, 4 }
  0x26   : > { %p895_p9 = por %p111_p6, %p110_p5  ;;  %s131_s4 = sand.u32 1, %s719_s17  }
  0x27   : > { %s382_s23 = sshll.u32 %s131_s4, 3  ;;  %s383_s15 = sshll.u32 %s731_s20, 3 }
  0x28   : > { %s1051_s28 = scalar_select %p895_p9, 1, 0 }
  0x29   : > { %s1053_s0 = sld [smem:[#allocation20_spill]]  ;;  %s135_s30 = scalar_lea.vmem [#allocation2], %s382_s23 }
  0x2a   : > { %1052 = sst [smem:[#allocation19_spill]] %s1051_s28  ;;  %s143_s6 = sshll.u32 %s135_s30, 4  ;;  %s144_s6 = int_to_ptr.vmem [resolvable:$true] %s143_s6 }
  0x2b   : > { %p402_p10 = pnand %p412_p7, %p842_p3  ;;  %p908_p11 = pnand %p412_p7, %p870_p12 }
  0x2c   : > { %p386_p0 = scmp.ge.s32.totalorder %s739_s22, 1  ;;  %p169_p1 = scmp.lt.s32.totalorder %s739_s22, 5 }
  0x2d   : > { %s132_s17 = scalar_lea.sflag [#allocation3], %s131_s4  ;;  %s150_s30 = sand.u32 1, %s707_s14  }
  0x2e   : > { %p914_p4 = pnand %p386_p0, %p169_p1  ;;  %s384_s23 = sshll.u32 %s150_s30, 7 }
  0x2f   : > { %s139_s25 = scalar_lea.hbm %s1053_s0, %s383_s15  ;;  %s154_s0 = scalar_lea.vmem [#allocation5], %s384_s23 }
  0x30   : > { %s141_s12 = sshll.u32 %s139_s25, 4  ;;  %s385_s25 = sshll.u32 %s735_s21, 3  ;;  %s142_s12 = int_to_ptr.hbm [resolvable:$true] %s141_s12 }
  0x31   : > { %404 = dma.hbm_to_vmem [thread:$0]  (!%p402_p10), %s142_s12, 128, %s144_s6, %s132_s17  }
  0x32   : > { %s158_s7 = scalar_lea.hbm %s1029_s1, %s385_s25  ;;  %s161_s20 = sshll.u32 %s154_s0, 4  ;;  %s162_s20 = int_to_ptr.vmem [resolvable:$true] %s161_s20 }
  0x33   : > { %s159_s27 = sshll.u32 %s158_s7, 4  ;;  %s151_s11 = scalar_lea.sflag [#allocation6], %s150_s30  ;;  %s160_s27 = int_to_ptr.hbm [resolvable:$true] %s159_s27 }
  0x34   : > { %s741_s4 = smov 256   ;;  %s742_s28 = smov 128  }
  0x35   : > { %s743_s17 = smov 8   ;;  %173 = sbr.rel (%p914_p4) target bundleno = 224 (0xe0), region = 28 }
  0x36   : > { %407 = dma.hbm_to_vmem [thread:$0]  (!%p908_p11), %s160_s27, 2048, %s162_s20, %s151_s11, %s741_s4, %s742_s28, %s743_s17  }
  0x37   : > { %s175_s6 = sand.u32 (!%p914_p4), 1, %s715_s16  }
  0x38   : > { %s928_s12 = sshll.u32 (!%p914_p4), %s175_s6, 3  ;;  %s176_s25 = scalar_lea.sflag (!%p914_p4), [#allocation3], %s175_s6 }
  0x39   : > { %s179_s23 = scalar_lea.vmem (!%p914_p4), [#allocation2], %s928_s12 }
  0x3a   : > { %674 = dma.done.wait (%p854_p8), %s176_s25, 128  }
  0x3b   : > { %676 = vsyncadd (%p854_p8), %s176_s25, 4294967168  ;;  %s185_s0 = sand.u32 1, %s703_s13  }
  0x3c   : > { %s388_s11 = sshll.u32 %s185_s0, 7  ;;  %s186_s20 = scalar_lea.sflag [#allocation6], %s185_s0 }
  0x3d   : > { %s936_s28 = scalar_lea.vmem [#allocation5], %s388_s11 }
  0x3e   : > { %678 = dma.done.wait (%p874_p13), %s186_s20, 2048  }
  0x3f   : > { %680 = vsyncadd (%p874_p13), %s186_s20, 4294965248  ;;  %v232_v0 = vld [vmem:[%s936_s28 + $0x78] sm:$0xff]  ;;  %v231_v1 = vld [vmem:[%s936_s28 + $0x70] sm:$0xff]  ;;  %s391_s3 = sshll.u32 %s723_s18, 1  ;;  %s213_s8 = sand.u32 1, %s691_s10  }
  0x40   : > { %233 = vmatpush.msra.mxu0 %v232_v0  ;;  %v230_v2 = vld [vmem:[%s936_s28 + $0x68] sm:$0xff]  ;;  %v229_v3 = vld [vmem:[%s936_s28 + $0x60] sm:$0xff]  ;;  %v228_v4 = vld [vmem:[%s936_s28 + $0x58] sm:$0xff]  ;;  %s265_s24 = sadd.s32 %s727_s19, %s391_s3  ;;  %s389_s26 = sshll.u32 %s213_s8, 3 }
  0x41   : > { %v227_v5 = vld [vmem:[%s936_s28 + $0x50] sm:$0xff]  ;;  %v226_v6 = vld [vmem:[%s936_s28 + $0x48] sm:$0xff]  ;;  %v225_v7 = vld [vmem:[%s936_s28 + $0x40] sm:$0xff]  ;;  %s392_s30 = sshll.u32 %s265_s24, 3  ;;  %s215_s27 = scalar_lea.vmem [#allocation7], %s389_s26 }
  0x42   : > { %234 = vmatpush.msra.mxu0 %v231_v1  ;;  %v224_v8 = vld [vmem:[%s936_s28 + $0x38] sm:$0xff]  ;;  %v223_v9 = vld [vmem:[%s936_s28 + $0x30] sm:$0xff]  ;;  %v222_v10 = vld [vmem:[%s936_s28 + $0x28] sm:$0xff]  ;;  %s267_s7 = scalar_lea.hbm %s1030_s2, %s392_s30  ;;  %s269_s4 = sshll.u32 %s215_s27, 4  ;;  %s270_s4 = int_to_ptr.vmem [resolvable:$true] %s269_s4 }
  0x43   : > { %v221_v11 = vld [vmem:[%s936_s28 + $0x20] sm:$0xff]  ;;  %v220_v12 = vld [vmem:[%s936_s28 + $0x18] sm:$0xff]  ;;  %v219_v13 = vld [vmem:[%s936_s28 + $0x10] sm:$0xff]  ;;  %s271_s17 = sshll.u32 %s267_s7, 4  ;;  %s255_s6 = scalar_lea.sflag [#allocation4], %s213_s8  ;;  %s272_s17 = int_to_ptr.hbm [resolvable:$true] %s271_s17 }
  0x44   : > { %235 = vmatpush.msra.mxu0 %v230_v2  ;;  %v218_v14 = vld [vmem:[%s936_s28 + $0x8] sm:$0xff]  ;;  %v217_v15 = vld [vmem:[%s936_s28] sm:$0xff]  ;;  %v216_v16 = vld [vmem:[%s179_s23] sm:$0xff]  ;;  %s603_s12 = sshra.s32 %s272_s17, 4  ;;  %s609_s23 = scalar_lea.hbm %s1030_s2, 32  ;;  %s604_s12 = int_to_ptr.hbm [resolvable:$true] %s603_s12 }
  0x45   : > { %s605_s18 = scalar_lea.hbm %s604_s12, 8  ;;  %p610_p13 = scmp.lt.s32.totalorder %s604_s12, %s1030_s2 }
  0x46   : > { %236 = vmatpush.msra.mxu0 %v229_v3  ;;  %p606_p3 = scmp.ne.s32.totalorder %s604_s12, %s605_s18  ;;  %p611_p5 = scmp.lt.s32.totalorder %s609_s23, %s605_s18 }
  0x48   : > { %237 = vmatpush.msra.mxu0 %v228_v4  ;;  %p607_p8 = pnand %p606_p3, %p888_p2  ;;  %p612_p6 = por %p611_p5, %p610_p13 }
  0x4a   : > { %238 = vmatpush.msra.mxu0 %v227_v5  ;;  %p608_p12 = pneg %p607_p8 }
  0x4c   : > { %239 = vmatpush.msra.mxu0 %v226_v6  ;;  %p613_p7 = pnand %p612_p6, %p608_p12 }
  0x4e   : > { %240 = vmatpush.msra.mxu0 %v225_v7 }
  0x50   : > { %241 = vmatpush.msra.mxu0 %v224_v8 }
  0x52   : > { %242 = vmatpush.msra.mxu0 %v223_v9 }
  0x54   : > { %243 = vmatpush.msra.mxu0 %v222_v10 }
  0x56   : > { %244 = vmatpush.msra.mxu0 %v221_v11 }
  0x58   : > { %245 = vmatpush.msra.mxu0 %v220_v12 }
  0x5a   : > { %246 = vmatpush.msra.mxu0 %v219_v13 }
  0x5c   : > { %247 = vmatpush.msra.mxu0 %v218_v14 }
  0x5e   : > { %248 = vmatpush.msra.mxu0 %v217_v15 }
  0x5f   : > { %249 = vmatmul.f32.vlgmr.msra.gmra.mxu0 %v216_v16 }
  0xdc   : > { %v250_v17 = vpop.f32.mrf.mxu0 }
  0xdd   : > { %253 = vst [vmem:[%s215_s27] sm:$0xff] %v250_v17 }
  0xde   : > { %616 = shalt.err (!%p613_p7)
}
  0xdf   : > { %399 = dma.vmem_to_hbm [thread:$0]  (%p888_p2), %s270_s4, 128, %s272_s17, %s255_s6  }
  0xe0 PF: > { %p413_p10 = scmp.ge.s32.totalorder %s739_s22, 2  ;;  %s283_s28 = sand.u32 1, %s687_s9  }
  0xe1   : > { %s284_s3 = scalar_lea.sflag [#allocation4], %s283_s28 }
  0xe2   : > { %p409_p11 = pnand %p413_p10, %p895_p9 }
  0xe4   : > { %p410_p0 = pneg %p409_p11 }
  0xe6   : > { %682 = dma.done.wait (%p410_p0), %s284_s3, 128  }
  0xe7   : > { %684 = vsyncadd (%p410_p0), %s284_s3, 4294967168  ;;  %s21_s22 = sadd.s32 1, %s739_s22   ;;  %s1058_s5 = sld [smem:[#allocation11_spill]] }
  0xe8   : > { %p981_p1 = scmp.ge.s32.totalorder %s21_s22, 6   ;;  %s1059_s11 = sld [smem:[#allocation18_spill]] }
  0xe9   : > { %s1060_s24 = sld [smem:[#allocation17_spill]]  ;;  %s1066_s9 = smov %s691_s10 }
  0xea   : > { %s1061_s26 = sld [smem:[#allocation12_spill]]  ;;  %s1068_s12 = smov %s703_s13 }
  0xeb   : > { %s1062_s17 = sld [smem:[#allocation16_spill]]  ;;  %s1069_s13 = smov %s707_s14 }
  0xec   : > { %s1063_s18 = sld [smem:[#allocation13_spill]]  ;;  %s1071_s15 = smov %s715_s16 }
  0xed   : > { %s1064_s20 = sld [smem:[#allocation14_spill]]  ;;  %s1067_s10 = smov %s1058_s5 }
  0xee   : > { %s1065_s30 = sld [smem:[#allocation15_spill]]  ;;  %s1073_s19 = smov %s735_s21 }
  0xef   : > { %s1070_s14 = smov %s1060_s24 }
  0xf0   : > { %s1072_s16 = smov %s1061_s26  ;;  %20 = sbr.rel (!%p981_p1) target bundleno = 14 (0xe), region = 86 }
  0xf4   : > { %s1074_s21 = smov %s1065_s30 }
  0xf5   :  { %290 = vsyncpa [#allocation3], 1 }
  0xf6   :  { %292 = vsyncpa [#allocation3 + $0x1], 1 }
  0xf7   :  { %293 = vsyncpa [#allocation6], 1 }
  0xf8   :  { %295 = vsyncpa [#allocation6 + $0x1], 1 }
  0xf9   :  { %296 = vsyncpa [#allocation4], 1 }
  0xfa   :  { %298 = vsyncpa [#allocation4 + $0x1], 1 }

</bundles_post_ra>
